<compile_context>
chip_gen: v7x
topology: tpu7x:2x2x1
jax: 0.10.0
libtpu: 0.0.40
codegen_flags: <defaults>
</compile_context>

<pallas_src>
import functools

import jax
import jax.numpy as jnp
import numpy as np
from jax import lax
from jax.experimental import pallas as pl
from jax.experimental.pallas import tpu as pltpu


# ----------------------------------------------------------------------------
# Linear: row-tiled x @ W + b with resident weight/bias
# ----------------------------------------------------------------------------
def _linear_kernel(x_ref, w_ref, b_ref, o_ref):
    # x: (tn, Din), w: (Din, Dout), b: (1, Dout) -> o: (tn, Dout)
    o_ref[...] = (
        jnp.dot(x_ref[...], w_ref[...], preferred_element_type=jnp.float32)
        + b_ref[...]
    ).astype(o_ref.dtype)


def _linear(x2d, w, b, *, row_tile=256):
    n, din = x2d.shape
    dout = w.shape[1]
    tn = n if n <= row_tile else row_tile
    return pl.pallas_call(
        _linear_kernel,
        out_shape=jax.ShapeDtypeStruct((n, dout), x2d.dtype),
        grid=(pl.cdiv(n, tn),),
        in_specs=[
            pl.BlockSpec((tn, din), lambda i: (i, 0)),
            pl.BlockSpec((din, dout), lambda i: (0, 0)),   # resident weight
            pl.BlockSpec((1, dout), lambda i: (0, 0)),     # resident bias
        ],
        out_specs=pl.BlockSpec((tn, dout), lambda i: (i, 0)),
        compiler_params=pltpu.CompilerParams(dimension_semantics=("parallel",)),
    )(x2d, w, b.reshape(1, dout))


# ----------------------------------------------------------------------------
# Attention: per-batch, all heads in one kernel body, lane-dense (T, H) output
# ----------------------------------------------------------------------------
def _attn_body(q_ref, k_ref, v_ref, ra_ref, m_ref, o_ref, num_heads, head_size):
    # q: (1,T,H)  k,v: (1,S,H)  ra: (nh,T,S)  m: (1,T,S) or None  o: (1,T,H)
    q = q_ref[0]                       # scaling already folded into W_q / b_q
    k = k_ref[0]
    v = v_ref[0]
    m = m_ref[0] if m_ref is not None else None   # additive f32 mask, shared by heads

    outs = []
    for h in range(num_heads):         # static unrolled head loop
        sl = slice(h * head_size, (h + 1) * head_size)
        qh, kh, vh = q[:, sl], k[:, sl], v[:, sl]

        # (T,hd) x (S,hd) contracted on hd -> (T,S); no explicit k transpose.
        s = lax.dot_general(qh, kh, (((1,), (1,)), ((), ())),
                            preferred_element_type=jnp.float32)
        s = s + ra_ref[h]
        if m is not None:
            s = s + m

        # numerically stable softmax, EUP reciprocal for the normalization
        s_max = jnp.max(s, axis=-1, keepdims=True)
        p = jnp.exp(s - s_max)
        denom = jnp.sum(p, axis=-1, keepdims=True)
        p = p * pl.reciprocal(denom, approx=True)

        if vh.dtype != jnp.float32:
            p = p.astype(vh.dtype)     # bf16 operands for the MXU; acc stays f32
        outs.append(jnp.dot(p, vh, preferred_element_type=jnp.float32))  # (T, hd)

    # single lane-dense store over the full hidden dim
    o_ref[0] = jnp.concatenate(outs, axis=-1).astype(o_ref.dtype)


def _attn_kernel_masked(q_ref, k_ref, v_ref, ra_ref, m_ref, o_ref, *,
                        num_heads, head_size):
    _attn_body(q_ref, k_ref, v_ref, ra_ref, m_ref, o_ref, num_heads, head_size)


def _attn_kernel_nomask(q_ref, k_ref, v_ref, ra_ref, o_ref, *,
                        num_heads, head_size):
    _attn_body(q_ref, k_ref, v_ref, ra_ref, None, o_ref, num_heads, head_size)


def _attention_core(qb, kb, vb, ra, mask_add, num_heads, head_size):
    # qb: (B,T,H)  kb/vb: (B,S,H)  ra: (nh,T,S)  mask_add: (B,T,S) f32 or None
    B, T, H = qb.shape
    S = kb.shape[1]
    nh = num_heads

    if mask_add is None:
        kernel = functools.partial(_attn_kernel_nomask,
                                   num_heads=nh, head_size=head_size)
    else:
        kernel = functools.partial(_attn_kernel_masked,
                                   num_heads=nh, head_size=head_size)

    in_specs = [
        pl.BlockSpec((1, T, H), lambda b: (b, 0, 0)),
        pl.BlockSpec((1, S, H), lambda b: (b, 0, 0)),
        pl.BlockSpec((1, S, H), lambda b: (b, 0, 0)),
        # randatt shared across batch -> constant index_map, fetched once, resident
        pl.BlockSpec((nh, T, S), lambda b: (0, 0, 0)),
    ]
    args = [qb, kb, vb, ra]
    if mask_add is not None:
        in_specs.append(pl.BlockSpec((1, T, S), lambda b: (b, 0, 0)))
        args.append(mask_add)

    return pl.pallas_call(
        kernel,
        out_shape=jax.ShapeDtypeStruct((B, T, H), qb.dtype),
        grid=(B,),
        in_specs=in_specs,
        out_specs=pl.BlockSpec((1, T, H), lambda b: (b, 0, 0)),
        compiler_params=pltpu.CompilerParams(dimension_semantics=("parallel",)),
    )(*args)


# ----------------------------------------------------------------------------
# Module
# ----------------------------------------------------------------------------
def _xavier_uniform(key, out_features, in_features, gain=1.0):
    bound = gain * (6.0 / (in_features + out_features)) ** 0.5
    w = jax.random.uniform(key, (out_features, in_features), jnp.float32, -bound, bound)
    return w.T  # store as (in, out) == PyTorch W^T


class MultiHeadwithRecRandomAttentionPallas:
    def __init__(self, hidden_size, num_heads, is_incremental=False,
                 q_size=None, k_size=None, v_size=None, output_size=None,
                 dropout=0.0, bias=True, add_bias_kv=False,
                 key=jax.random.PRNGKey(0)):
        q_size = q_size or hidden_size
        k_size = k_size or hidden_size
        v_size = v_size or hidden_size
        output_size = output_size or hidden_size
        head_size = hidden_size // num_heads
        assert head_size * num_heads == hidden_size
        assert not add_bias_kv  # matches the reference NotImplementedError path

        self.hidden_size = hidden_size
        self.num_heads = num_heads
        self.head_size = head_size
        self.is_incremental = is_incremental
        self.output_size = output_size
        self.dropout = dropout
        self.scaling = head_size ** (-0.5)

        gain = 1.0 / 2.0 ** 0.5 if (q_size == v_size) else 1.0
        kq, kk, kv, ko, kbq, kbk, kbv = jax.random.split(key, 7)
        self.wq = _xavier_uniform(kq, hidden_size, q_size, gain)
        self.wk = _xavier_uniform(kk, hidden_size, k_size, gain)
        self.wv = _xavier_uniform(kv, hidden_size, v_size, gain)
        self.wo = _xavier_uniform(ko, output_size, hidden_size, 1.0)
        if bias:
            def _lin_bias(k_, fan_in):
                bnd = 1.0 / fan_in ** 0.5
                return jax.random.uniform(k_, (hidden_size,), jnp.float32, -bnd, bnd)
            self.bq = _lin_bias(kbq, q_size)
            self.bk = _lin_bias(kbk, k_size)
            self.bv = _lin_bias(kbv, v_size)
        else:
            self.bq = self.bk = self.bv = jnp.zeros((hidden_size,), jnp.float32)
        self.bo = jnp.zeros((output_size,), jnp.float32)  # reset_parameters zeroes it

        # fold 1/sqrt(hd) scaling into the q projection (removes per-element mul
        # from the attention kernel); unscaled params kept for the reference check.
        self.wq_scaled = self.wq * self.scaling
        self.bq_scaled = self.bq * self.scaling

    def __call__(self, q, k, v, randatt, mask=None):
        T, B, _ = q.shape
        S = k.shape[0]
        H, nh, hd = self.hidden_size, self.num_heads, self.head_size

        # batch-major once up front; projections then produce the (B, seq, H)
        # layout the attention kernel consumes directly (no intermediate transposes).
        qb = q.transpose(1, 0, 2)   # (B, T, Dq)
        kb = k.transpose(1, 0, 2)   # (B, S, Dk)
        vb = v.transpose(1, 0, 2)   # (B, S, Dv)

        qp = _linear(qb.reshape(B * T, -1), self.wq_scaled, self.bq_scaled).reshape(B, T, H)
        kp = _linear(kb.reshape(B * S, -1), self.wk, self.bk).reshape(B, S, H)
        vp = _linear(vb.reshape(B * S, -1), self.wv, self.bv).reshape(B, S, H)

        ra = randatt[0, :, :T, :S].astype(jnp.float32)   # (nh, T, S), broadcast over B

        if mask is None:
            mask_add = None                              # no zero-mask stream
        elif mask.dtype == jnp.bool_:
            # large finite negative: exp underflows to 0 exactly, no -inf - -inf NaNs
            mask_add = jnp.where(mask, jnp.float32(-1e30), jnp.float32(0.0))
        else:
            mask_add = mask.astype(jnp.float32)

        ob = _attention_core(qp, kp, vp, ra, mask_add, nh, hd)         # (B, T, H)

        o = _linear(ob.reshape(B * T, H), self.wo, self.bo)
        o = o.reshape(B, T, self.output_size)
        return o.transpose(1, 0, 2)                                    # (T, B, out)


# ----------------------------------------------------------------------------
# Pure-JAX reference (mirrors the PyTorch module, uses the UNscaled weights)
# ----------------------------------------------------------------------------
def _reference(mod, q, k, v, randatt, mask):
    T, B, _ = q.shape
    S = k.shape[0]
    H, nh, hd = mod.hidden_size, mod.num_heads, mod.head_size
    qp = (q.reshape(T * B, -1) @ mod.wq + mod.bq).reshape(T, B, H) * mod.scaling
    kp = (k.reshape(S * B, -1) @ mod.wk + mod.bk).reshape(S, B, H)
    vp = (v.reshape(S * B, -1) @ mod.wv + mod.bv).reshape(S, B, H)
    qh = qp.reshape(T, B * nh, hd).transpose(1, 0, 2)
    kh = kp.reshape(S, B * nh, hd).transpose(1, 0, 2)
    vh = vp.reshape(S, B * nh, hd).transpose(1, 0, 2)
    score = jnp.einsum("btd,bsd->bts", qh, kh)
    syn = jnp.broadcast_to(randatt[:, :, :T, :S], (B, nh, T, S)).reshape(B * nh, T, S)
    score = score + syn
    if mask is not None:
        madd = jnp.where(mask, -jnp.inf, 0.0) if mask.dtype == jnp.bool_ else mask
        score = (score.reshape(B, nh, T, S) + madd[:, None]).reshape(B * nh, T, S)
    p = jax.nn.softmax(score, axis=-1)
    o = jnp.einsum("bts,bsd->btd", p, vh)
    o = o.transpose(1, 0, 2).reshape(T, B, H)
    return (o.reshape(T * B, H) @ mod.wo + mod.bo).reshape(T, B, mod.output_size)


# ----------------------------------------------------------------------------
if __name__ == "__main__":
    key = jax.random.PRNGKey(0)
    k_mod, k_q, k_k, k_v, k_ra = jax.random.split(key, 5)

    hidden_size, num_heads = 32, 4
    T, S, B = 8, 8, 2

    mod = MultiHeadwithRecRandomAttentionPallas(
        hidden_size, num_heads, is_incremental=False, key=k_mod
    )

    q = jax.random.normal(k_q, (T, B, hidden_size), jnp.float32)
    k = jax.random.normal(k_k, (S, B, hidden_size), jnp.float32)
    v = jax.random.normal(k_v, (S, B, hidden_size), jnp.float32)
    randatt = 0.1 * jax.random.normal(k_ra, (1, num_heads, T, S), jnp.float32)
    # causal boolean mask (True = masked); at least one unmasked entry per row
    mask = jnp.broadcast_to(
        jnp.triu(jnp.ones((T, S), jnp.bool_), k=1), (B, T, S)
    )

    # masked path
    out = jax.block_until_ready(mod(q, k, v, randatt, mask))
    ref = _reference(mod, q, k, v, randatt, mask)
    np.testing.assert_allclose(np.asarray(out), np.asarray(ref), rtol=2e-3, atol=2e-3)
    assert out.shape == (T, B, hidden_size)

    # no-mask path (exercises the mask-free kernel variant)
    out_nm = jax.block_until_ready(mod(q, k, v, randatt, None))
    ref_nm = _reference(mod, q, k, v, randatt, None)
    np.testing.assert_allclose(np.asarray(out_nm), np.asarray(ref_nm), rtol=2e-3, atol=2e-3)

    print("KERNEL_OK")
</pallas_src>

<mosaic_0001>
module attributes {stable_mosaic.version = 11 : i64} {
  func.func @_linear_kernel(%arg0: i32, %arg1: memref<16x32xf32, #tpu.memory_space<vmem>>, %arg2: memref<32x32xf32, #tpu.memory_space<vmem>>, %arg3: memref<1x32xf32, #tpu.memory_space<vmem>>, %arg4: memref<16x32xf32, #tpu.memory_space<vmem>>) attributes {dimension_semantics = [#tpu.dimension_semantics<parallel>], iteration_bounds = array<i64: 1>, scalar_prefetch = 0 : i64, scratch_operands = 0 : i64, tpu.core_type = #tpu.core_type<tc>, window_params = [{transform_indices = @transform_0, window_bounds = array<i64: 16, 32>}, {pipeline_mode = #tpu.pipeline_mode<synchronous>, transform_indices = @transform_1, window_bounds = array<i64: 32, 32>}, {pipeline_mode = #tpu.pipeline_mode<synchronous>, transform_indices = @transform_2, window_bounds = array<i64: 1, 32>}, {transform_indices = @transform_3, window_bounds = array<i64: 16, 32>}]} {
    %c0 = arith.constant 0 : index
    %c0_0 = arith.constant 0 : index
    %0 = vector.load %arg1[%c0, %c0_0] : memref<16x32xf32, #tpu.memory_space<vmem>>, vector<16x32xf32>
    %c0_1 = arith.constant 0 : index
    %c0_2 = arith.constant 0 : index
    %1 = vector.load %arg2[%c0_1, %c0_2] : memref<32x32xf32, #tpu.memory_space<vmem>>, vector<32x32xf32>
    %cst = arith.constant dense<0.000000e+00> : vector<16x32xf32>
    %2 = tpu.matmul %0, %1, %cst {dimension_numbers = #tpu.dot_dimension_numbers<[1], [0], [0], [1], [0, 0, 1, 1], [], []>} : vector<16x32xf32>, vector<32x32xf32>, vector<16x32xf32> -> vector<16x32xf32>
    %c0_3 = arith.constant 0 : index
    %c0_4 = arith.constant 0 : index
    %3 = vector.load %arg3[%c0_3, %c0_4] : memref<1x32xf32, #tpu.memory_space<vmem>>, vector<1x32xf32>
    %4 = vector.broadcast %3 : vector<1x32xf32> to vector<16x32xf32>
    %5 = arith.addf %2, %4 : vector<16x32xf32>
    %c0_5 = arith.constant 0 : index
    %c0_6 = arith.constant 0 : index
    %6 = vector.load %arg4[%c0_5, %c0_6] : memref<16x32xf32, #tpu.memory_space<vmem>>, vector<16x32xf32>
    tpu.vector_store %arg4[%c0_5, %c0_6], %5 {strides = array<i32>} : memref<16x32xf32, #tpu.memory_space<vmem>>, vector<16x32xf32>,
    return
  }
  func.func @transform_0(%arg0: i32) -> (i32, i32) {
    %c0_i32 = arith.constant 0 : i32
    %c0_i32_0 = arith.constant 0 : i32
    return %arg0, %c0_i32 : i32, i32
  }
  func.func @transform_1(%arg0: i32) -> (i32, i32) {
    %c0_i32 = arith.constant 0 : i32
    %c0_i32_0 = arith.constant 0 : i32
    %c0_i32_1 = arith.constant 0 : i32
    return %c0_i32, %c0_i32_0 : i32, i32
  }
  func.func @transform_2(%arg0: i32) -> (i32, i32) {
    %c0_i32 = arith.constant 0 : i32
    %c0_i32_0 = arith.constant 0 : i32
    %c0_i32_1 = arith.constant 0 : i32
    return %c0_i32, %c0_i32_0 : i32, i32
  }
  func.func @transform_3(%arg0: i32) -> (i32, i32) {
    %c0_i32 = arith.constant 0 : i32
    %c0_i32_0 = arith.constant 0 : i32
    return %arg0, %c0_i32 : i32, i32
  }
}

</mosaic_0001>

<bundles_post_ra>
// kernel: tpu_custom_call.1
= control target key start
LH: loop header
LB: loop body
LE: loop exit
PB: predicated region body
PF: predicated region fallthrough
CT: control target
= control target key end

     0   :  { %8 = vsyncpa [#allocation3], 0  ;;  %s340_s0 = inlined_call_operand.hbm [shape: f32[16,32], index: 0, kind: input, shape index: {}]   ;;  %s341_s1 = inlined_call_operand.hbm [shape: f32[32,32], index: 1, kind: input, shape index: {}]   ;;  %s342_s2 = inlined_call_operand.vmem [shape: f32[1,32], index: 2, kind: input, shape index: {}]   ;;  %s343_s3 = inlined_call_operand.hbm [shape: f32[16,32], index: 3, kind: output, shape index: {}]  }
   0x1   :  { %9 = vsyncpa [#allocation6], 0 }
   0x2   :  { %10 = vsyncpa [#allocation4], 0  ;;  %s263_s12 = smov [#allocation2]   ;;  %s191_s16 = scalar_lea.hbm %s340_s0, 256 }
   0x3   :  { %s16_s13 = sshll.u32 %s263_s12, 4  ;;  %p192_p0 = scmp.ne.s32.totalorder %s340_s0, %s191_s16  ;;  %s17_s13 = int_to_ptr.vmem [resolvable:$true] %s16_s13 }
   0x4   :  { %p195_p1 = scmp.lt.u32.totalorder %s191_s16, %s340_s0 }
   0x6   :  { %p197_p2 = pnand %p195_p1, %p192_p0 }
   0x8   :  { %200 = shalt.err (!%p197_p2)
}
   0x9   :  { %s201_s21 = scalar_lea.vmem %s17_s13, 256  ;;  %p206_p4 = scmp.lt.s32.totalorder %s17_s13, %s17_s13 }
   0xa   :  { %p202_p3 = scmp.ne.s32.totalorder %s17_s13, %s201_s21  ;;  %p207_p5 = scmp.lt.s32.totalorder %s201_s21, %s201_s21 }
   0xc   :  { %p208_p6 = por %p207_p5, %p206_p4 }
   0xe   :  { %p209_p7 = pnand %p208_p6, %p202_p3 }
  0x10   :  { %212 = shalt.err (!%p209_p7)
}
  0x11   :  { %s264_s22 = smov 128   ;;  %s265_s23 = smov 8  }
  0x12   :  { %22 = dma.hbm_to_vmem [thread:$0]  %s340_s0, 256, %s17_s13, [#allocation3], %s264_s22, %s264_s22, %s265_s23  }
  0x13   :  { %s266_s26 = smov [#allocation5]   ;;  %s213_s30 = scalar_lea.hbm %s341_s1, 512 }
  0x14   :  { %s28_s27 = sshll.u32 %s266_s26, 4  ;;  %p214_p8 = scmp.ne.s32.totalorder %s341_s1, %s213_s30  ;;  %s29_s27 = int_to_ptr.vmem [resolvable:$true] %s28_s27 }
  0x15   :  { %p217_p9 = scmp.lt.u32.totalorder %s213_s30, %s341_s1 }
  0x17   :  { %p219_p10 = pnand %p217_p9, %p214_p8 }
  0x19   :  { %222 = shalt.err (!%p219_p10)
}
  0x1a   :  { %s223_s8 = scalar_lea.vmem %s29_s27, 512  ;;  %p228_p12 = scmp.lt.s32.totalorder %s29_s27, %s29_s27 }
  0x1b   :  { %p224_p11 = scmp.ne.s32.totalorder %s29_s27, %s223_s8  ;;  %p229_p13 = scmp.lt.s32.totalorder %s223_s8, %s223_s8 }
  0x1d   :  { %p230_p0 = por %p229_p13, %p228_p12 }
  0x1f   :  { %p231_p1 = pnand %p230_p0, %p224_p11 }
  0x21   :  { %234 = shalt.err (!%p231_p1)
}
  0x22   :  { %34 = dma.hbm_to_vmem [thread:$0]  %s341_s1, 512, %s29_s27, [#allocation6], %s264_s22, %s264_s22, %s265_s23  }
  0x23   :  { %257 = dma.done.wait [#allocation3], 256  }
  0x24   :  { %258 = vsyncadd [#allocation3], 4294967040 }
  0x25   :  { %259 = dma.done.wait [#allocation6], 512  }
  0x26   :  { %260 = vsyncadd [#allocation6], 4294966784  ;;  %vm56_vm0 = vcmask 261120   ;;  %v45_v0 = vld [vmem:[#allocation5] sm:$0xff]  ;;  %v46_v1 = vld [vmem:[#allocation5 + $0x8] sm:$0xff]  ;;  %s267_s11 = smov [#allocation7]  }
  0x27   :  { %v47_v2 = vld [vmem:[#allocation5 + $0x10] sm:$0xff]  ;;  %v178_v3 = vpack.c.bf16 %v46_v1, %v45_v0  ;;  %v48_v4 = vld [vmem:[#allocation5 + $0x18] sm:$0xff]  ;;  %s145_s12 = sshll.u32 %s267_s11, 4  ;;  %s146_s12 = int_to_ptr.vmem [resolvable:$true] %s145_s12 }
  0x28   :  { %v43_v5 = vld [vmem:[#allocation2] sm:$0xff]  ;;  %v182_v6 = vpack.c.bf16 %v48_v4, %v47_v2  ;;  %v44_v7 = vld [vmem:[#allocation2 + $0x8] sm:$0xff]  ;;  %s235_s13 = scalar_lea.vmem %s146_s12, 256  ;;  %p240_p3 = scmp.lt.s32.totalorder %s146_s12, %s146_s12 }
  0x29   :  { %175 = vmatprep.mubr.msk.f32.mxu0 %vm56_vm0, %v43_v5  ;;  %179 = vmatprep.subr.bf16.mxu0 %v178_v3  ;;  %v158_v8 = vld [vmem:[%s342_s2] ss:$0 sm:$0xff]  ;;  %p236_p2 = scmp.ne.s32.totalorder %s146_s12, %s235_s13  ;;  %p241_p4 = scmp.lt.s32.totalorder %s235_s13, %s235_s13 }
  0x2a   :  { %181 = vmatpush3.bf16.msra.mxu0 %v178_v3 }
  0x2b   :  { %183 = vmatprep.subr.bf16.mxu0 %v182_v6  ;;  %p242_p5 = por %p241_p4, %p240_p3 }
  0x2d   :  { %p243_p6 = pnand %p242_p5, %p236_p2 }
  0x2e   :  { %185 = vmatpush3.bf16.msra.mxu0 %v182_v6 }
  0x31   :  { %176 = vmatmul.mubr.msk.f32.vlgmr.msra.gmra.mrb[0].mxu0 %vm56_vm0, %v44_v7 }
 0x104   :  { %v177_v9 = vpop.f32.mrb[0].mxu0 }
 0x105   :  { %v135_v10 = vadd.f32 %v177_v9, %v158_v8  ;;  %v129_v11 = vpop.f32.mrb[1].mxu0 }
 0x106   :  { %v130_v12 = vadd.f32 %v158_v8, %v129_v11 }
 0x107   :  { %139 = vst.msk [vmem:[#allocation7 + $0x8] sm:$0xff] %vm56_vm0, %v135_v10 }
 0x108   :  { %138 = vst.msk [vmem:[#allocation7] sm:$0xff] %vm56_vm0, %v130_v12 }
 0x109   :  { %246 = shalt.err (!%p243_p6)
}
 0x10a   :  { %s247_s15 = scalar_lea.hbm %s343_s3, 256 }
 0x10b   :  { %p248_p7 = scmp.ne.s32.totalorder %s343_s3, %s247_s15  ;;  %p251_p8 = scmp.lt.u32.totalorder %s247_s15, %s343_s3 }
 0x10d   :  { %p253_p9 = pnand %p251_p8, %p248_p7 }
 0x10f   :  { %256 = shalt.err (!%p253_p9)
}
 0x110   :  { %151 = dma.vmem_to_hbm [thread:$0]  %s146_s12, 256, %s343_s3, [#allocation4], %s264_s22, %s264_s22, %s265_s23  }
 0x111   :  { %261 = dma.done.wait [#allocation4], 256  }
 0x112   :  { %262 = vsyncadd [#allocation4], 4294967040 }
 0x113   :  { %155 = vsyncpa [#allocation3], 1 }
 0x114   :  { %156 = vsyncpa [#allocation6], 1 }
 0x115   :  { %157 = vsyncpa [#allocation4], 1 }

</bundles_post_ra>
